<compile_context>
chip_gen: v7x
topology: tpu7x:2x2x1
jax: 0.10.0
libtpu: 0.0.40
codegen_flags: <defaults>
</compile_context>

<pallas_src>
import jax
import jax.numpy as jnp
from jax.experimental import pallas as pl
from jax.experimental.pallas import tpu as pltpu

_LANES = 128
_SUBLANES = 8


def _baseline_kernel(w_ref, obs_ref, mask_ref, t_ref, out_ref):
    # w_ref   : (F,)                 float32, SMEM  (F = 2*D + 4)
    # obs_ref : (D, tile_rows, 128)  obs dtype, VMEM
    # mask_ref: (tile_rows, 128)     float32, VMEM
    # t_ref   : (tile_rows, 128)     float32, VMEM   (raw time indices)
    # out_ref : (tile_rows, 128)     float32, VMEM
    D = obs_ref.shape[0]

    mask = mask_ref[...]
    ts = t_ref[...] * mask * (1.0 / 100.0)

    # ones-feature + Horner form of the time polynomial (fewer VPU muls).
    acc = mask * w_ref[2 * D + 3]
    acc = acc + ts * (w_ref[2 * D] + ts * (w_ref[2 * D + 1] + ts * w_ref[2 * D + 2]))

    # Observation features, unrolled over the tiny D as lane-dense VPU FMAs:
    #   obs_d * w[d] + obs_d^2 * w[D+d] == obs_d * (w[d] + obs_d * w[D+d])
    for d in range(D):
        od = obs_ref[d].astype(jnp.float32)
        acc = acc + od * (w_ref[d] + od * w_ref[D + d])

    out_ref[...] = acc.astype(out_ref.dtype)


def _round_up(x, m):
    return ((x + m - 1) // m) * m


def linear_feature_baseline_forward(observations, mask, weight, *, tile_rows=None):
    """observations: (T, B, D), mask: (T, B), weight: (2*D+4,) -> values (T, B) f32."""
    T, B, D = observations.shape
    F = 2 * D + 4
    assert weight.shape == (F,)

    N = T * B
    itemsize = jnp.dtype(observations.dtype).itemsize

    # Rows of 128 lanes covering the flattened (T*B) axis, multiple of 8 sublanes.
    rows = _round_up(max(pl.cdiv(N, _LANES), 1), _SUBLANES)

    if tile_rows is None:
        # Keep one double-buffered pipeline stage well under the 16 MiB
        # scoped-VMEM default (v5e) — tiny anyway for realistic D.
        per_row_bytes = (D * itemsize + 3 * 4) * _LANES      # obs + mask + t + out
        budget = 8 * 1024 * 1024
        tile_rows = max(_SUBLANES,
                        min(1024, (budget // (2 * per_row_bytes)) // _SUBLANES * _SUBLANES))
    tile_rows = min(tile_rows, rows)
    tile_rows = max(_SUBLANES, (tile_rows // _SUBLANES) * _SUBLANES)
    rows = _round_up(rows, tile_rows)
    n_pad = rows * _LANES
    num_tiles = rows // tile_rows

    # --- lane-dense layout plumbing (pure XLA reshape/transpose/pad) -----------
    # No dtype upcast here: a bf16 obs stays bf16 in HBM, cast happens in-kernel.
    obs_dn = observations.reshape(N, D).T                       # (D, N)
    obs_dn = jnp.pad(obs_dn, ((0, 0), (0, n_pad - N)))
    obs_blk = obs_dn.reshape(D, rows, _LANES)

    mask_f = mask.astype(jnp.float32).reshape(N)
    mask_blk = jnp.pad(mask_f, (0, n_pad - N)).reshape(rows, _LANES)

    t_f = jnp.broadcast_to(
        jnp.arange(T, dtype=jnp.float32)[:, None], (T, B)).reshape(N)
    t_blk = jnp.pad(t_f, (0, n_pad - N)).reshape(rows, _LANES)

    w = weight.astype(jnp.float32)

    cost = pl.CostEstimate(
        flops=N * (4 * D + 10),
        transcendentals=0,
        bytes_accessed=N * (D * itemsize + 3 * 4),
    )

    out = pl.pallas_call(
        _baseline_kernel,
        out_shape=jax.ShapeDtypeStruct((rows, _LANES), jnp.float32),
        grid=(num_tiles,),
        in_specs=[
            pl.BlockSpec(memory_space=pltpu.MemorySpace.SMEM),            # weight (scalars)
            pl.BlockSpec((D, tile_rows, _LANES), lambda i: (0, i, 0)),    # observations
            pl.BlockSpec((tile_rows, _LANES), lambda i: (i, 0)),          # mask
            pl.BlockSpec((tile_rows, _LANES), lambda i: (i, 0)),          # time indices
        ],
        out_specs=pl.BlockSpec((tile_rows, _LANES), lambda i: (i, 0)),
        compiler_params=pltpu.CompilerParams(
            dimension_semantics=("parallel",),
            vmem_limit_bytes=32 * 1024 * 1024,
        ),
        cost_estimate=cost,
    )(w, obs_blk, mask_blk, t_blk)

    return out.reshape(-1)[:N].reshape(T, B)


def _reference_forward(observations, mask, weight):
    """Pure-JAX mirror of the PyTorch forward (materializes features)."""
    T, B, D = observations.shape
    ones = mask[:, :, None]
    t = (jnp.arange(T, dtype=jnp.float32).reshape(-1, 1, 1) * ones) / 100.0
    feats = jnp.concatenate(
        [observations, observations ** 2, t, t ** 2, t ** 3, ones], axis=2)
    values = feats.reshape(-1, feats.shape[-1]) @ weight
    return values.reshape(T, B)


if __name__ == "__main__":
    # Small shapes consistent with the module: seq T=8, batch B=2, input_size D=4
    T, B, D = 8, 2, 4
    F = 2 * D + 4

    key = jax.random.PRNGKey(0)
    k_obs, k_w = jax.random.split(key)

    observations = jax.random.normal(k_obs, (T, B, D), dtype=jnp.float32)
    # mask: episode 0 full length, episode 1 ends early (last 3 steps masked)
    mask = jnp.ones((T, B), dtype=jnp.float32)
    mask = mask.at[T - 3:, 1].set(0.0)
    # The module inits weight to zeros; use a deterministic nonzero weight so
    # the kernel exercises the full matvec path.
    weight = jax.random.normal(k_w, (F,), dtype=jnp.float32)

    # TODO(synk): fit() (regularized lstsq on masked features) is a host-side
    # solver, not part of the forward pass, and is not implemented as a kernel.
    values = linear_feature_baseline_forward(observations, mask, weight)
    values = jax.block_until_ready(values)

    expected = _reference_forward(observations, mask, weight)
    assert values.shape == (T, B)
    assert jnp.allclose(values, expected, atol=1e-5, rtol=1e-5)

    print("KERNEL_OK")
</pallas_src>

<mosaic_0001>
module attributes {stable_mosaic.version = 11 : i64} {
  func.func @_baseline_kernel(%arg0: i32, %arg1: memref<12xf32, #tpu.memory_space<smem>>, %arg2: memref<4x8x128xf32, #tpu.memory_space<vmem>>, %arg3: memref<8x128xf32, #tpu.memory_space<vmem>>, %arg4: memref<8x128xf32, #tpu.memory_space<vmem>>, %arg5: memref<8x128xf32, #tpu.memory_space<vmem>>) attributes {dimension_semantics = [#tpu.dimension_semantics<parallel>], iteration_bounds = array<i64: 1>, scalar_prefetch = 0 : i64, scratch_operands = 0 : i64, tpu.core_type = #tpu.core_type<tc>, window_params = [{transform_indices = @transform_0, window_bounds = array<i64: 12>}, {transform_indices = @transform_1, window_bounds = array<i64: 4, 8, 128>}, {transform_indices = @transform_2, window_bounds = array<i64: 8, 128>}, {transform_indices = @transform_3, window_bounds = array<i64: 8, 128>}, {transform_indices = @transform_4, window_bounds = array<i64: 8, 128>}]} {
    %c0 = arith.constant 0 : index
    %c0_0 = arith.constant 0 : index
    %0 = vector.load %arg3[%c0, %c0_0] : memref<8x128xf32, #tpu.memory_space<vmem>>, vector<8x128xf32>
    %c0_1 = arith.constant 0 : index
    %c0_2 = arith.constant 0 : index
    %1 = vector.load %arg4[%c0_1, %c0_2] : memref<8x128xf32, #tpu.memory_space<vmem>>, vector<8x128xf32>
    %2 = arith.mulf %1, %0 : vector<8x128xf32>
    %cst = arith.constant 0.00999999977 : f32
    %3 = vector.broadcast %cst : f32 to vector<8x128xf32>
    %4 = arith.mulf %2, %3 : vector<8x128xf32>
    %c11 = arith.constant 11 : index
    %5 = memref.load %arg1[%c11] : memref<12xf32, #tpu.memory_space<smem>>
    %6 = vector.broadcast %5 : f32 to vector<8x128xf32>
    %7 = arith.mulf %0, %6 : vector<8x128xf32>
    %c8 = arith.constant 8 : index
    %8 = memref.load %arg1[%c8] : memref<12xf32, #tpu.memory_space<smem>>
    %c9 = arith.constant 9 : index
    %9 = memref.load %arg1[%c9] : memref<12xf32, #tpu.memory_space<smem>>
    %c10 = arith.constant 10 : index
    %10 = memref.load %arg1[%c10] : memref<12xf32, #tpu.memory_space<smem>>
    %11 = vector.broadcast %10 : f32 to vector<8x128xf32>
    %12 = arith.mulf %4, %11 : vector<8x128xf32>
    %13 = vector.broadcast %9 : f32 to vector<8x128xf32>
    %14 = arith.addf %13, %12 : vector<8x128xf32>
    %15 = arith.mulf %4, %14 : vector<8x128xf32>
    %16 = vector.broadcast %8 : f32 to vector<8x128xf32>
    %17 = arith.addf %16, %15 : vector<8x128xf32>
    %18 = arith.mulf %4, %17 : vector<8x128xf32>
    %19 = arith.addf %7, %18 : vector<8x128xf32>
    %c0_3 = arith.constant 0 : index
    %c0_4 = arith.constant 0 : index
    %c0_5 = arith.constant 0 : index
    %20 = vector.load %arg2[%c0_3, %c0_4, %c0_5] : memref<4x8x128xf32, #tpu.memory_space<vmem>>, vector<1x8x128xf32>
    %21 = vector.shape_cast %20 : vector<1x8x128xf32> to vector<8x128xf32>
    %c0_6 = arith.constant 0 : index
    %22 = memref.load %arg1[%c0_6] : memref<12xf32, #tpu.memory_space<smem>>
    %c4 = arith.constant 4 : index
    %23 = memref.load %arg1[%c4] : memref<12xf32, #tpu.memory_space<smem>>
    %24 = vector.broadcast %23 : f32 to vector<8x128xf32>
    %25 = arith.mulf %21, %24 : vector<8x128xf32>
    %26 = vector.broadcast %22 : f32 to vector<8x128xf32>
    %27 = arith.addf %26, %25 : vector<8x128xf32>
    %28 = arith.mulf %21, %27 : vector<8x128xf32>
    %29 = arith.addf %19, %28 : vector<8x128xf32>
    %c1 = arith.constant 1 : index
    %c0_7 = arith.constant 0 : index
    %c0_8 = arith.constant 0 : index
    %30 = vector.load %arg2[%c1, %c0_7, %c0_8] : memref<4x8x128xf32, #tpu.memory_space<vmem>>, vector<1x8x128xf32>
    %31 = vector.shape_cast %30 : vector<1x8x128xf32> to vector<8x128xf32>
    %c1_9 = arith.constant 1 : index
    %32 = memref.load %arg1[%c1_9] : memref<12xf32, #tpu.memory_space<smem>>
    %c5 = arith.constant 5 : index
    %33 = memref.load %arg1[%c5] : memref<12xf32, #tpu.memory_space<smem>>
    %34 = vector.broadcast %33 : f32 to vector<8x128xf32>
    %35 = arith.mulf %31, %34 : vector<8x128xf32>
    %36 = vector.broadcast %32 : f32 to vector<8x128xf32>
    %37 = arith.addf %36, %35 : vector<8x128xf32>
    %38 = arith.mulf %31, %37 : vector<8x128xf32>
    %39 = arith.addf %29, %38 : vector<8x128xf32>
    %c2 = arith.constant 2 : index
    %c0_10 = arith.constant 0 : index
    %c0_11 = arith.constant 0 : index
    %40 = vector.load %arg2[%c2, %c0_10, %c0_11] : memref<4x8x128xf32, #tpu.memory_space<vmem>>, vector<1x8x128xf32>
    %41 = vector.shape_cast %40 : vector<1x8x128xf32> to vector<8x128xf32>
    %c2_12 = arith.constant 2 : index
    %42 = memref.load %arg1[%c2_12] : memref<12xf32, #tpu.memory_space<smem>>
    %c6 = arith.constant 6 : index
    %43 = memref.load %arg1[%c6] : memref<12xf32, #tpu.memory_space<smem>>
    %44 = vector.broadcast %43 : f32 to vector<8x128xf32>
    %45 = arith.mulf %41, %44 : vector<8x128xf32>
    %46 = vector.broadcast %42 : f32 to vector<8x128xf32>
    %47 = arith.addf %46, %45 : vector<8x128xf32>
    %48 = arith.mulf %41, %47 : vector<8x128xf32>
    %49 = arith.addf %39, %48 : vector<8x128xf32>
    %c3 = arith.constant 3 : index
    %c0_13 = arith.constant 0 : index
    %c0_14 = arith.constant 0 : index
    %50 = vector.load %arg2[%c3, %c0_13, %c0_14] : memref<4x8x128xf32, #tpu.memory_space<vmem>>, vector<1x8x128xf32>
    %51 = vector.shape_cast %50 : vector<1x8x128xf32> to vector<8x128xf32>
    %c3_15 = arith.constant 3 : index
    %52 = memref.load %arg1[%c3_15] : memref<12xf32, #tpu.memory_space<smem>>
    %c7 = arith.constant 7 : index
    %53 = memref.load %arg1[%c7] : memref<12xf32, #tpu.memory_space<smem>>
    %54 = vector.broadcast %53 : f32 to vector<8x128xf32>
    %55 = arith.mulf %51, %54 : vector<8x128xf32>
    %56 = vector.broadcast %52 : f32 to vector<8x128xf32>
    %57 = arith.addf %56, %55 : vector<8x128xf32>
    %58 = arith.mulf %51, %57 : vector<8x128xf32>
    %59 = arith.addf %49, %58 : vector<8x128xf32>
    %c0_16 = arith.constant 0 : index
    %c0_17 = arith.constant 0 : index
    %60 = vector.load %arg5[%c0_16, %c0_17] : memref<8x128xf32, #tpu.memory_space<vmem>>, vector<8x128xf32>
    tpu.vector_store %arg5[%c0_16, %c0_17], %59 {strides = array<i32>} : memref<8x128xf32, #tpu.memory_space<vmem>>, vector<8x128xf32>,
    return
  }
  func.func @transform_0(%arg0: i32) -> i32 {
    %c0_i32 = arith.constant 0 : i32
    %c0_i32_0 = arith.constant 0 : i32
    return %c0_i32 : i32
  }
  func.func @transform_1(%arg0: i32) -> (i32, i32, i32) {
    %c0_i32 = arith.constant 0 : i32
    %c0_i32_0 = arith.constant 0 : i32
    %c0_i32_1 = arith.constant 0 : i32
    return %c0_i32, %arg0, %c0_i32_0 : i32, i32, i32
  }
  func.func @transform_2(%arg0: i32) -> (i32, i32) {
    %c0_i32 = arith.constant 0 : i32
    %c0_i32_0 = arith.constant 0 : i32
    return %arg0, %c0_i32 : i32, i32
  }
  func.func @transform_3(%arg0: i32) -> (i32, i32) {
    %c0_i32 = arith.constant 0 : i32
    %c0_i32_0 = arith.constant 0 : i32
    return %arg0, %c0_i32 : i32, i32
  }
  func.func @transform_4(%arg0: i32) -> (i32, i32) {
    %c0_i32 = arith.constant 0 : i32
    %c0_i32_0 = arith.constant 0 : i32
    return %arg0, %c0_i32 : i32, i32
  }
}

</mosaic_0001>

<bundles_post_ra>
// kernel: tpu_custom_call.1
= control target key start
LH: loop header
LB: loop body
LE: loop exit
PB: predicated region body
PF: predicated region fallthrough
CT: control target
= control target key end

     0   :  { %9 = vsyncpa [#allocation5], 0  ;;  %s326_s0 = inlined_call_operand.hbm [shape: f32[12], index: 0, kind: input, shape index: {}]   ;;  %s327_s1 = inlined_call_operand.hbm [shape: f32[4,8,128], index: 1, kind: input, shape index: {}]   ;;  %s328_s2 = inlined_call_operand.hbm [shape: f32[8,128], index: 2, kind: input, shape index: {}]   ;;  %s329_s3 = inlined_call_operand.vmem [shape: f32[8,128], index: 3, kind: input, shape index: {}]   ;;  %s330_s4 = inlined_call_operand.hbm [shape: f32[8,128], index: 4, kind: output, shape index: {}]  }
   0x1   :  { %10 = vsyncpa [#allocation3], 0 }
   0x2   :  { %11 = vsyncpa [#allocation8], 0 }
   0x3   :  { %12 = vsyncpa [#allocation4], 0  ;;  %s148_s17 = scalar_lea.hbm %s326_s0, 16 }
   0x4   :  { %p149_p0 = scmp.ne.s32.totalorder %s326_s0, %s148_s17  ;;  %p152_p1 = scmp.lt.u32.totalorder %s148_s17, %s326_s0 }
   0x6   :  { %p154_p2 = pnand %p152_p1, %p149_p0 }
   0x8   :  { %157 = shalt.err (!%p154_p2)
}
   0x9   :  { %s232_s22 = smov [#allocation2]   ;;  %s233_s25 = smov [#allocation6]  }
   0xa   :  { %20 = dma.hbm_to_smem %s326_s0, 16, %s232_s22, [#allocation5]  }
   0xb   :  { %s26_s26 = sshll.u32 %s233_s25, 4  ;;  %s158_s29 = scalar_lea.hbm %s327_s1, 512  ;;  %s27_s26 = int_to_ptr.vmem [resolvable:$true] %s26_s26 }
   0xc   :  { %p159_p3 = scmp.ne.s32.totalorder %s327_s1, %s158_s29  ;;  %p162_p4 = scmp.lt.u32.totalorder %s158_s29, %s327_s1 }
   0xe   :  { %p164_p5 = pnand %p162_p4, %p159_p3 }
  0x10   :  { %167 = shalt.err (!%p164_p5)
}
  0x11   :  { %s168_s8 = scalar_lea.vmem %s27_s26, 512  ;;  %p173_p7 = scmp.lt.s32.totalorder %s27_s26, %s27_s26 }
  0x12   :  { %p169_p6 = scmp.ne.s32.totalorder %s27_s26, %s168_s8  ;;  %p174_p8 = scmp.lt.s32.totalorder %s168_s8, %s168_s8 }
  0x14   :  { %p175_p9 = por %p174_p8, %p173_p7 }
  0x16   :  { %p176_p10 = pnand %p175_p9, %p169_p6 }
  0x18   :  { %179 = shalt.err (!%p176_p10)
}
  0x19   :  { %s234_s0 = smov 128   ;;  %s235_s9 = smov 8  }
  0x1a   :  { %32 = dma.hbm_to_vmem [thread:$0]  %s327_s1, 512, %s27_s26, [#allocation3], %s234_s0, %s234_s0, %s235_s9  }
  0x1b   :  { %s236_s12 = smov [#allocation7]   ;;  %s180_s16 = scalar_lea.hbm %s328_s2, 128 }
  0x1c   :  { %s39_s13 = sshll.u32 %s236_s12, 4  ;;  %p181_p11 = scmp.ne.s32.totalorder %s328_s2, %s180_s16  ;;  %s40_s13 = int_to_ptr.vmem [resolvable:$true] %s39_s13 }
  0x1d   :  { %p184_p12 = scmp.lt.u32.totalorder %s180_s16, %s328_s2 }
  0x1f   :  { %p186_p13 = pnand %p184_p12, %p181_p11 }
  0x21   :  { %189 = shalt.err (!%p186_p13)
}
  0x22   :  { %s190_s21 = scalar_lea.vmem %s40_s13, 128  ;;  %p195_p1 = scmp.lt.s32.totalorder %s40_s13, %s40_s13 }
  0x23   :  { %p191_p0 = scmp.ne.s32.totalorder %s40_s13, %s190_s21  ;;  %p196_p2 = scmp.lt.s32.totalorder %s190_s21, %s190_s21 }
  0x25   :  { %p197_p3 = por %p196_p2, %p195_p1 }
  0x27   :  { %p198_p4 = pnand %p197_p3, %p191_p0 }
  0x29   :  { %201 = shalt.err (!%p198_p4)
}
  0x2a   :  { %42 = dma.hbm_to_vmem [thread:$0]  %s328_s2, 128, %s40_s13, [#allocation8]  }
  0x2b   :  { %224 = dma.done.wait [#allocation5], 16  }
  0x2c   :  { %225 = vsyncadd [#allocation5], 4294967280 }
  0x2d   :  { %226 = dma.done.wait [#allocation3], 512  }
  0x2e   :  { %227 = vsyncadd [#allocation3], 4294966784 }
  0x2f   :  { %228 = dma.done.wait [#allocation8], 128  }
  0x30   :  { %229 = vsyncadd [#allocation8], 4294967168 }
  0x31   :  { %54 = sfence }
  0x32   :  { %v55_v0 = vld [vmem:[#allocation7] sm:$0xff]  ;;  %v56_v1 = vld [vmem:[%s329_s3] sm:$0xff]  ;;  %s302_s25 = sld [smem:[#allocation2 + $0xb]]  ;;  %s304_s26 = sld [smem:[#allocation2 + $0x8]]  ;;  %v84_v7 = vld [vmem:[#allocation6 + $0x8] sm:$0xff] }
  0x33   :  { %v57_v2 = vmul.f32 %v56_v1, %v55_v0  ;;  %s133_s27 = sld [smem:[#allocation2 + $0x9]]  ;;  %s134_s28 = sld [smem:[#allocation2 + $0xa]]  ;;  %v74_v4 = vld [vmem:[#allocation6] sm:$0xff]  ;;  %v94_v13 = vld [vmem:[#allocation6 + $0x10] sm:$0xff]  ;;  %v104_v20 = vld [vmem:[#allocation6 + $0x18] sm:$0xff] }
  0x34   :  { %s75_s2 = sld [smem:[#allocation2]]  ;;  %s135_s29 = sld [smem:[#allocation2 + $0x4]] }
  0x35   :  { %s306_s30 = sld [smem:[#allocation2 + $0x1]]  ;;  %s137_s5 = sld [smem:[#allocation2 + $0x5]]  ;;  %v58_v3 = vmul.f32 0.01, %v57_v2 }
  0x36   :  { %s139_s6 = sld [smem:[#allocation2 + $0x6]]  ;;  %s308_s7 = sld [smem:[#allocation2 + $0x2]] }
  0x37   :  { %s141_s8 = sld [smem:[#allocation2 + $0x7]]  ;;  %s140_s3 = sld [smem:[#allocation2 + $0x3]] }
  0x38   :  { %v60_v17 = vstv %s302_s25  ;;  %v70_v18 = vstv %s304_s26  ;;  %s237_s0 = smov [#allocation9]  }
  0x39   :  { %v65_v5 = vstv %s134_s28  ;;  %v67_v6 = vstv %s133_s27  ;;  %v61_v26 = vmul.f32 %v60_v17, %v55_v0  ;;  %s120_s9 = sshll.u32 %s237_s0, 4  ;;  %s121_s9 = int_to_ptr.vmem [resolvable:$true] %s120_s9 }
  0x3a   :  { %v66_v8 = vmul.f32 %v65_v5, %v58_v3  ;;  %v77_v9 = vstv %s135_s29  ;;  %v79_v11 = vstv %s75_s2  ;;  %s202_s10 = scalar_lea.vmem %s121_s9, 128  ;;  %p207_p6 = scmp.lt.s32.totalorder %s121_s9, %s121_s9 }
  0x3b   :  { %v78_v10 = vmul.f32 %v77_v9, %v74_v4  ;;  %v87_v12 = vstv %s137_s5  ;;  %v89_v19 = vstv %s306_s30  ;;  %p203_p5 = scmp.ne.s32.totalorder %s121_s9, %s202_s10  ;;  %p208_p7 = scmp.lt.s32.totalorder %s202_s10, %s202_s10 }
  0x3c   :  { %v68_v14 = vadd.f32 %v67_v6, %v66_v8  ;;  %v88_v15 = vmul.f32 %v87_v12, %v84_v7  ;;  %v97_v16 = vstv %s139_s6  ;;  %v99_v25 = vstv %s308_s7 }
  0x3d   :  { %v107_v21 = vstv %s141_s8  ;;  %v80_v23 = vadd.f32 %v79_v11, %v78_v10  ;;  %v98_v24 = vmul.f32 %v97_v16, %v94_v13  ;;  %v109_v30 = vstv %s140_s3  ;;  %p209_p8 = por %p208_p7, %p207_p6 }
  0x3e   :  { %v69_v22 = vmul.f32 %v68_v14, %v58_v3  ;;  %v90_v28 = vadd.f32 %v89_v19, %v88_v15  ;;  %v108_v29 = vmul.f32 %v107_v21, %v104_v20 }
  0x3f   :  { %v81_v32 = vmul.f32 %v80_v23, %v74_v4  ;;  %v100_v33 = vadd.f32 %v99_v25, %v98_v24  ;;  %p210_p9 = pnand %p209_p8, %p203_p5 }
  0x40   :  { %v71_v27 = vadd.f32 %v70_v18, %v69_v22  ;;  %v91_v35 = vmul.f32 %v90_v28, %v84_v7  ;;  %v110_v36 = vadd.f32 %v109_v30, %v108_v29 }
  0x41   :  { %v101_v38 = vmul.f32 %v100_v33, %v94_v13 }
  0x42   :  { %v72_v31 = vmul.f32 %v71_v27, %v58_v3  ;;  %v111_v40 = vmul.f32 %v110_v36, %v104_v20 }
  0x44   :  { %v73_v34 = vadd.f32 %v72_v31, %v61_v26 }
  0x46   :  { %v82_v37 = vadd.f32 %v81_v32, %v73_v34 }
  0x48   :  { %v92_v39 = vadd.f32 %v91_v35, %v82_v37 }
  0x4a   :  { %v102_v41 = vadd.f32 %v101_v38, %v92_v39 }
  0x4c   :  { %v112_v42 = vadd.f32 %v111_v40, %v102_v41 }
  0x4e   :  { %113 = vst [vmem:[#allocation9] sm:$0xff] %v112_v42 }
  0x4f   :  { %213 = shalt.err (!%p210_p9)
}
  0x50   :  { %s214_s13 = scalar_lea.hbm %s330_s4, 128 }
  0x51   :  { %p215_p10 = scmp.ne.s32.totalorder %s330_s4, %s214_s13  ;;  %p218_p11 = scmp.lt.u32.totalorder %s214_s13, %s330_s4 }
  0x53   :  { %p220_p12 = pnand %p218_p11, %p215_p10 }
  0x55   :  { %223 = shalt.err (!%p220_p12)
}
  0x56   :  { %123 = dma.vmem_to_hbm [thread:$0]  %s121_s9, 128, %s330_s4, [#allocation4]  }
  0x57   :  { %230 = dma.done.wait [#allocation4], 128  }
  0x58   :  { %231 = vsyncadd [#allocation4], 4294967168 }
  0x59   :  { %127 = vsyncpa [#allocation3], 1 }
  0x5a   :  { %128 = vsyncpa [#allocation8], 1 }
  0x5b   :  { %129 = vsyncpa [#allocation4], 1 }
  0x5c   :  { %130 = vsyncpa [#allocation5], 1 }

</bundles_post_ra>
